<compile_context>
chip_gen: v5e
topology: v5e:2x2
jax: 0.10.0
libtpu: 0.0.40
codegen_flags: <defaults>
</compile_context>

<pallas_src>
import jax
import jax.numpy as jnp
from jax.experimental import pallas as pl
from jax.experimental.pallas import tpu as pltpu

_LANE = 128
_TARGET_IN_TILE_BYTES = 4 << 20   # ~4 MiB of input streamed per grid step


def _round_up(a: int, b: int) -> int:
    return (a + b - 1) // b * b


def _make_wlp_kernel(use_scratch_acc: bool):
    """Kernel factory.

    use_scratch_acc=False: accumulate directly into the f32 output block, which
    stays VMEM-resident across the layer (last, "arbitrary") grid axis.
    use_scratch_acc=True : accumulate in an f32 VMEM scratch and cast to the
    output dtype only on the final layer step (for bf16/f16 outputs).
    """

    def kernel(w_ref, x_ref, o_ref, *scratch):
        # w_ref : SMEM (L,) f32   -- scalar-prefetched *normalized* layer weights
        # x_ref : VMEM (TM, 128)  -- one layer's row tile (layer dim squeezed)
        # o_ref : VMEM (TM, 128)  -- output tile, resident across the layer axis
        acc_ref = scratch[0] if use_scratch_acc else o_ref
        l = pl.program_id(1)

        wx = w_ref[l] * x_ref[...].astype(jnp.float32)

        @pl.when(l == 0)
        def _():
            acc_ref[...] = wx            # direct write: no zero-init + reload

        @pl.when(l > 0)
        def _():
            acc_ref[...] += wx

        if use_scratch_acc:
            @pl.when(l == pl.num_programs(1) - 1)
            def _():
                o_ref[...] = acc_ref[...].astype(o_ref.dtype)

    return kernel


def weighted_layer_pooling(all_hidden_states, layer_weights, layer_start, *, out_dtype=None):
    """JAX/Pallas equivalent of WeightedLayerPooling.forward.

    all_hidden_states: (num_layers+1, B, S, H)   -- passed WHOLE (no host slice)
    layer_weights    : (num_layers+1-layer_start,)
    out_dtype        : None -> float32 (matches torch promotion: f32 weights * x);
                       pass e.g. jnp.bfloat16 to emit input-dtype output with
                       internal f32 accumulation.
    """
    L_total, B, S, H = (int(d) for d in all_hidden_states.shape)
    L = L_total - layer_start
    assert layer_weights.shape == (L,)

    in_dtype = all_hidden_states.dtype
    out_dtype = jnp.dtype(jnp.float32 if out_dtype is None else out_dtype)
    use_scratch_acc = out_dtype != jnp.dtype(jnp.float32)

    # Normalize weights host-side (tiny (L,) op): kernel computes sum_l w_norm[l]*x[l].
    # Note: sum(w)==0 divides by zero exactly like the PyTorch reference.
    w32 = layer_weights.astype(jnp.float32)
    w_norm = w32 / jnp.sum(w32)

    # ---- layout: (L_total, B, S, H) -> (L_total, R, 128), reshape-only (free). ----
    N = B * S * H
    x_flat = all_hidden_states.reshape(L_total, N)
    if N % _LANE != 0:
        # Fallback only when B*S*H isn't lane-aligned (materializes one copy).
        x_flat = jnp.pad(x_flat, ((0, 0), (0, _LANE - N % _LANE)))
    R = x_flat.shape[1] // _LANE
    x_tiled = x_flat.reshape(L_total, R, _LANE)

    # ---- row-tile size ----
    in_itemsize = jnp.dtype(in_dtype).itemsize
    sub = 8 * max(1, 4 // in_itemsize)                 # 8 f32 / 16 bf16 / 32 int8-fp8
    tm_cap = max(sub, _TARGET_IN_TILE_BYTES // (_LANE * in_itemsize))

    nt = pl.cdiv(R, tm_cap)                            # number of row tiles
    if R > tm_cap // 2:
        nt = max(nt, 2)                                # keep both v7x TCs busy
    if nt > 1 and nt % 2:
        nt += 1                                        # even tile count: balanced split
    TM = min(_round_up(pl.cdiv(R, nt), sub), R)        # block == full dim when R is tiny
    num_row_tiles = pl.cdiv(R, TM)                     # non-divisible grid: no row padding
    grid = (num_row_tiles, L)                          # reduction (layer) axis LAST

    # ---- VMEM budget: explicit limit with headroom, capped for v7x (64 MiB physical). ----
    in_tile_b = TM * _LANE * in_itemsize
    out_tile_b = TM * _LANE * out_dtype.itemsize
    acc_tile_b = TM * _LANE * 4 if use_scratch_acc else 0
    vmem_limit = min(48 << 20,
                     max(2 * in_tile_b + 2 * out_tile_b + acc_tile_b + (8 << 20), 16 << 20))

    grid_spec = pltpu.PrefetchScalarGridSpec(
        num_scalar_prefetch=1,                          # normalized weights -> SMEM
        grid=grid,
        in_specs=[
            # One (TM, 128) lane-dense tile of one layer per step; the layer dim is
            # squeezed and layer_start is folded into the index_map (no host slice).
            pl.BlockSpec(
                (pl.Squeezed(), TM, _LANE),
                lambda r, l, w: (l + layer_start, r, 0),
            ),
        ],
        # Output block index constant along the layer axis -> VMEM-resident block.
        out_specs=pl.BlockSpec((TM, _LANE), lambda r, l, w: (r, 0)),
        scratch_shapes=(
            [pltpu.VMEM((TM, _LANE), jnp.float32)] if use_scratch_acc else []
        ),
    )

    out_tiled = pl.pallas_call(
        _make_wlp_kernel(use_scratch_acc),
        out_shape=jax.ShapeDtypeStruct((R, _LANE), out_dtype),
        grid_spec=grid_spec,
        compiler_params=pltpu.CompilerParams(
            dimension_semantics=("parallel", "arbitrary"),
            vmem_limit_bytes=int(vmem_limit),
        ),
    )(w_norm, x_tiled)

    out_flat = out_tiled.reshape(R * _LANE)
    if R * _LANE != N:
        out_flat = out_flat[:N]
    return out_flat.reshape(B, S, H)


if __name__ == "__main__":
    # Module config (small, synthetic): num_hidden_layers=8, layer_start=4
    num_hidden_layers = 8
    layer_start = 4
    L = num_hidden_layers + 1 - layer_start
    B, S, H = 2, 8, 32

    # Deterministic init: module default is all-ones weights.
    layer_weights = jnp.ones((L,), dtype=jnp.float32)
    key = jax.random.PRNGKey(0)
    all_hidden_states = jax.random.normal(
        key, (num_hidden_layers + 1, B, S, H), dtype=jnp.float32
    )

    out = weighted_layer_pooling(all_hidden_states, layer_weights, layer_start)
    out = jax.block_until_ready(out)

    # Reference (plain JAX, mirrors the PyTorch forward exactly).
    x = all_hidden_states[layer_start:]
    ref = (layer_weights[:, None, None, None] * x).sum(axis=0) / layer_weights.sum()
    assert out.shape == (B, S, H) and out.dtype == jnp.float32
    assert jnp.allclose(out, ref, atol=1e-5, rtol=1e-5)

    # Secondary check: bf16 inputs with bf16 output -- exercises the f32 scratch
    # accumulator + cast-on-final-store path and the 16-row bf16 sublane tiling.
    key2 = jax.random.PRNGKey(0)
    w2 = jnp.arange(1.0, L + 1.0, dtype=jnp.float32)          # non-uniform weights
    hs2 = jax.random.normal(key2, (num_hidden_layers + 1, 2, 8, 128), jnp.float32)
    hs2_bf16 = hs2.astype(jnp.bfloat16)
    out2 = weighted_layer_pooling(hs2_bf16, w2, layer_start, out_dtype=jnp.bfloat16)
    out2 = jax.block_until_ready(out2)
    ref2 = (w2[:, None, None, None] * hs2_bf16.astype(jnp.float32)[layer_start:]).sum(
        axis=0
    ) / w2.sum()
    assert out2.dtype == jnp.bfloat16
    assert jnp.allclose(out2.astype(jnp.float32), ref2, atol=3e-2, rtol=3e-2)

    print("KERNEL_OK")
</pallas_src>

<mosaic_0001>
module attributes {stable_mosaic.version = 11 : i64} {
  func.func @kernel(%arg0: i32, %arg1: i32, %arg2: memref<5xf32, #tpu.memory_space<smem>>, %arg3: memref<1x4x128xf32, #tpu.memory_space<vmem>>, %arg4: memref<4x128xf32, #tpu.memory_space<vmem>>) attributes {dimension_semantics = [#tpu.dimension_semantics<parallel>, #tpu.dimension_semantics<arbitrary>], iteration_bounds = array<i64: 1, 5>, scalar_prefetch = 1 : i64, scratch_operands = 0 : i64, tpu.core_type = #tpu.core_type<tc>, window_params = [{transform_indices = @transform_0, window_bounds = array<i64: 1, 4, 128>}, {transform_indices = @transform_1, window_bounds = array<i64: 4, 128>}]} {
    %0 = arith.index_cast %arg1 : i32 to index
    %1 = memref.load %arg2[%0] : memref<5xf32, #tpu.memory_space<smem>>
    %c0 = arith.constant 0 : index
    %c0_0 = arith.constant 0 : index
    %c0_1 = arith.constant 0 : index
    %2 = vector.load %arg3[%c0, %c0_0, %c0_1] : memref<1x4x128xf32, #tpu.memory_space<vmem>>, vector<1x4x128xf32>
    %3 = vector.shape_cast %2 : vector<1x4x128xf32> to vector<4x128xf32>
    %4 = vector.broadcast %1 : f32 to vector<4x128xf32>
    %5 = arith.mulf %4, %3 : vector<4x128xf32>
    %c0_i32 = arith.constant 0 : i32
    %6 = arith.cmpi eq, %arg1, %c0_i32 : i32
    %7 = arith.extui %6 : i1 to i32
    %c0_i32_2 = arith.constant 0 : i32
    %8 = arith.cmpi ne, %7, %c0_i32_2 : i32
    scf.if %8 {
      %c0_5 = arith.constant 0 : index
      %c0_6 = arith.constant 0 : index
      %12 = vector.load %arg4[%c0_5, %c0_6] : memref<4x128xf32, #tpu.memory_space<vmem>>, vector<4x128xf32>
      tpu.vector_store %arg4[%c0_5, %c0_6], %5 {strides = array<i32>} : memref<4x128xf32, #tpu.memory_space<vmem>>, vector<4x128xf32>,
    } else {
    }
    %c0_i32_3 = arith.constant 0 : i32
    %9 = arith.cmpi sgt, %arg1, %c0_i32_3 : i32
    %10 = arith.extui %9 : i1 to i32
    %c0_i32_4 = arith.constant 0 : i32
    %11 = arith.cmpi ne, %10, %c0_i32_4 : i32
    scf.if %11 {
      %c0_5 = arith.constant 0 : index
      %c0_6 = arith.constant 0 : index
      %12 = vector.load %arg4[%c0_5, %c0_6] : memref<4x128xf32, #tpu.memory_space<vmem>>, vector<4x128xf32>
      %13 = arith.addf %12, %5 : vector<4x128xf32>
      %c0_7 = arith.constant 0 : index
      %c0_8 = arith.constant 0 : index
      %14 = vector.load %arg4[%c0_7, %c0_8] : memref<4x128xf32, #tpu.memory_space<vmem>>, vector<4x128xf32>
      tpu.vector_store %arg4[%c0_7, %c0_8], %13 {strides = array<i32>} : memref<4x128xf32, #tpu.memory_space<vmem>>, vector<4x128xf32>,
    } else {
    }
    return
  }
  func.func @transform_0(%arg0: i32, %arg1: i32, %arg2: memref<5xf32, #tpu.memory_space<smem>>) -> (i32, i32, i32) {
    %c4_i32 = arith.constant 4 : i32
    %0 = arith.addi %arg1, %c4_i32 : i32
    %c0_i32 = arith.constant 0 : i32
    %c0_i32_0 = arith.constant 0 : i32
    return %0, %arg0, %c0_i32 : i32, i32, i32
  }
  func.func @transform_1(%arg0: i32, %arg1: i32, %arg2: memref<5xf32, #tpu.memory_space<smem>>) -> (i32, i32) {
    %c0_i32 = arith.constant 0 : i32
    %c0_i32_0 = arith.constant 0 : i32
    return %arg0, %c0_i32 : i32, i32
  }
}

</mosaic_0001>

<bundles_post_ra>
// kernel: tpu_custom_call.1
= control target key start
LH: loop header
LB: loop body
LE: loop exit
PB: predicated region body
PF: predicated region fallthrough
CT: control target
= control target key end

     0   :  { %s449_s12 = smov [#allocation3]   ;;  %s562_s0 = inlined_call_operand.hbm [shape: f32[5], index: 0, kind: input, shape index: {}]   ;;  %s563_s1 = inlined_call_operand.hbm [shape: f32[9,4,128], index: 1, kind: input, shape index: {}]   ;;  %s564_s2 = inlined_call_operand.hbm [shape: f32[4,128], index: 2, kind: output, shape index: {}]  }
   0x1   :  { %s8_s11 = sshll.u32 %s562_s0, 4  ;;  %s9_s11 = int_to_ptr.hbm [resolvable:$true] %s8_s11 }
   0x2   :  { %11 = dma.hbm_to_smem %s9_s11, 16, %s449_s12, [#allocation2] }
   0x3   :  { %415 = dma.done.wait [#allocation2], 16 }
   0x4   :  { %416 = vsyncadd [#allocation2], 4294967280 }
   0x5   :  { %14 = sfence }
   0x6   :  { %15 = vsyncpa [#allocation5], 0 }
   0x7   :  { %17 = vsyncpa [#allocation5 + $0x1], 0 }
   0x8   :  { %18 = vsyncpa [#allocation6], 0  ;;  %s469_s13 = smov 0   ;;  %s471_s14 = smov 0  }
   0x9   :  { %s473_s15 = smov 0   ;;  %s475_s16 = smov 0  }
   0xa   :  { %s477_s17 = smov 0   ;;  %s479_s0 = smov 0  }
   0xb LB: > { %s245_s18 = sadd.s32 4294967295, %s447_s0   ;;  %s33_s19 = sadd.s32 1, %s443_s17  ;;  %s447_s0 = sphi %s479_s0, %s24_s0   ;;  %s443_s17 = sphi %s477_s17, %s571_s17   ;;  %s439_s16 = sphi %s475_s16, %s570_s16   ;;  %s435_s15 = sphi %s473_s15, %s569_s15   ;;  %s431_s14 = sphi %s471_s14, %s568_s14   ;;  %s427_s13 = sphi %s469_s13, %s567_s13  }
   0xc   : > { %p34_p0 = scmp.ge.s32.totalorder %s33_s19, 5  ;;  %s40_s20 = sadd.s32 4, %s443_s17 }
   0xd   : > { %s47_s21 = sadd.s32 1, %s435_s15  ;;  %p54_p1 = scmp.ne.s32.totalorder %s435_s15, %s431_s14 }
   0xe   : > { %s573_s19 = smov (%p34_p0, %s33_s19), 0  ;;  %p55_p2 = scmp.eq.s32.totalorder %s447_s0, 0 }
   0xf   : > { %p60_p3 = scmp.ne.s32.totalorder %s431_s14, %s427_s13  ;;  %s41_s22 = sadd.s32 4, %s573_s19 }
  0x10   : > { %p61_p4 = scmp.eq.s32.totalorder %s245_s18, 0  ;;  %s42_s23 = ssub.s32 %s40_s20, %s41_s22 }
  0x11   : > { %p510_p5 = por %p55_p2, %p54_p1  ;;  %p45_p6 = scmp.eq.s32.totalorder %s42_s23, 0 }
  0x12   : > { %p514_p7 = por %p61_p4, %p60_p3  ;;  %p268_p8 = scmp.lt.s32.totalorder %s447_s0, 5 }
  0x13   : > { %s520_s26 = scalar_select %p45_p6, %s435_s15, %s47_s21  }
  0x14   : > { %s110_s27 = sand.u32 1, %s435_s15   ;;  %s249_s28 = sshll.u32 %s443_s17, 2 }
  0x15   : > { %s248_s29 = sshll.u32 %s110_s27, 2  ;;  %s206_s4 = scalar_lea.hbm %s563_s1, %s249_s28 }
  0x16   : > { %s207_s5 = scalar_lea.hbm %s206_s4, 16  ;;  %s114_s6 = scalar_lea.vmem [#allocation4], %s248_s29 }
  0x17   : > { %s124_s7 = sshll.u32 %s114_s6, 4  ;;  %s122_s8 = sshll.u32 %s207_s5, 4  ;;  %s125_s7 = int_to_ptr.vmem [resolvable:$true] %s124_s7  ;;  %s123_s8 = int_to_ptr.hbm [resolvable:$true] %s122_s8 }
  0x18   : > { %p265_p9 = pnand %p268_p8, %p510_p5  ;;  %p250_p10 = scmp.ge.s32.totalorder %s447_s0, 1 }
  0x19   : > { %p129_p11 = scmp.lt.s32.totalorder %s447_s0, 6  ;;  %s111_s9 = scalar_lea.sflag [#allocation5], %s110_s27 }
  0x1a   : > { %267 = dma.hbm_to_vmem [thread:$0]  (!%p265_p9), %s123_s8, 64, %s125_s7, %s111_s9  }
  0x1b   : > { %p130_p12 = pnand %p250_p10, %p129_p11 }
  0x1c   : > { %s135_s10 = sand.u32 (!%p130_p12), 1, %s431_s14  }
  0x1d   : > { %133 = sbr.rel (%p130_p12) target bundleno = 62 (0x3e), region = 24  ;;  %s251_s11 = sshll.u32 (!%p130_p12), %s135_s10, 2 }
  0x1e   : > { %s136_s12 = scalar_lea.sflag (!%p130_p12), [#allocation5], %s135_s10  ;;  %s139_s13 = scalar_lea.vmem (!%p130_p12), [#allocation4], %s251_s11 }
  0x22   : > { %418 = dma.done.wait (%p514_p7), %s136_s12, 64  }
  0x23   : > { %420 = vsyncadd (%p514_p7), %s136_s12, 4294967232  ;;  %s155_s20 = sld [smem:[#allocation3 + %s439_s16]]  ;;  %v156_v0 = vld [vmem:[%s139_s13] sm:$0xf]  ;;  %p252_p13 = scmp.ne.s32.totalorder %s439_s16, 0 }
  0x26   : > { %162 = sbr.rel (%p252_p13) target bundleno = 45 (0x2d), region = 32 }
  0x29   : > { %v157_v1 = vstv %s155_s20 }
  0x2a   : > { %v158_v2 = vmul.f32 %v157_v1, %v156_v0 }
  0x2c   : > { %163 = vst [vmem:[#allocation7] sm:$0xf] %v158_v2 }
  0x2d PF: > { %p253_p0 = scmp.le.s32.totalorder %s439_s16, 0 }
  0x2f   : > { %167 = sbr.rel (%p253_p0) target bundleno = 56 (0x38), region = 36 }
  0x34   : > { %v168_v3 = vld [vmem:[#allocation7] sm:$0xf] }
  0x35   : > { %v169_v4 = vadd.f32 %v168_v3, %v158_v2 }
  0x37   : > { %170 = vst [vmem:[#allocation7] sm:$0xf] %v169_v4 }
  0x38 PF: > { %p269_p1 = scmp.eq.s32.totalorder %s245_s18, 4  ;;  %s181_s23 = sshll.u32 %s564_s2, 4  ;;  %s182_s23 = int_to_ptr.hbm [resolvable:$true] %s181_s23 }
  0x39   : > { %s450_s24 = smov [#allocation7]  }
  0x3a   : > { %s179_s25 = sshll.u32 %s450_s24, 4  ;;  %s180_s25 = int_to_ptr.vmem [resolvable:$true] %s179_s25 }
  0x3b   : > { %261 = dma.vmem_to_hbm [thread:$0]  (%p269_p1), %s180_s25, 64, %s182_s23, [#allocation6]  }
  0x3c   : > { %422 = dma.done.wait (%p269_p1), [#allocation6], 64  }
  0x3d   : > { %424 = vsyncadd (%p269_p1), [#allocation6], 4294967232 }
  0x3e PF: > { %s24_s0 = sadd.s32 1, %s447_s0   ;;  %s567_s13 = smov %s431_s14 }
  0x3f   : > { %p21_p2 = scmp.ge.s32.totalorder %s24_s0, 7   ;;  %s568_s14 = smov %s435_s15 }
  0x40   : > { %s569_s15 = smov %s520_s26  ;;  %s570_s16 = smov %s443_s17 }
  0x41   : > { %s571_s17 = smov %s573_s19  ;;  %23 = sbr.rel (!%p21_p2) target bundleno = 11 (0xb), region = 70 }
  0x46   :  { %195 = vsyncpa [#allocation5], 1 }
  0x47   :  { %197 = vsyncpa [#allocation5 + $0x1], 1 }
  0x48   :  { %198 = vsyncpa [#allocation6], 1 }
  0x49   :  { %200 = vsyncpa [#allocation6 + $0x1], 1 }

</bundles_post_ra>
